<compile_context>
chip_gen: v7x
topology: tpu7x:2x2x1
jax: 0.10.0
libtpu: 0.0.40
codegen_flags: <defaults>
</compile_context>

<pallas_src>
import functools

import numpy as np
import jax
import jax.numpy as jnp
from jax import lax
from jax.experimental import pallas as pl
from jax.experimental.pallas import tpu as pltpu


def _policy_mlp_kernel(x_ref, w1_ref, b1_ref, w2_ref, b2_ref, w3_ref, b3_ref,
                       o_ref, *, compute_dtype):
    """Fused 3-layer MLP.  x_ref is a native-layout [TILE_B, obs] state tile."""
    # Cast to the MXU compute dtype in-kernel (no separate XLA cast pass).
    x = x_ref[...].astype(compute_dtype)                         # [TILE_B, obs]

    # Layer 1: h1 = W1 @ x^T  (batch -> lanes via the contraction, no transpose op)
    h1 = lax.dot_general(w1_ref[...], x, (((1,), (1,)), ((), ())),
                         preferred_element_type=jnp.float32)     # [2*obs, TILE_B]
    h1 = jnp.maximum(h1 + b1_ref[...], 0.0)

    # Layer 2: Linear(2*obs -> 2*act) + ReLU
    h2 = lax.dot_general(w2_ref[...], h1.astype(compute_dtype),
                         (((1,), (0,)), ((), ())),
                         preferred_element_type=jnp.float32)     # [2*act, TILE_B]
    h2 = jnp.maximum(h2 + b2_ref[...], 0.0)

    # Layer 3: Linear(2*act -> act), raw logits
    out = lax.dot_general(w3_ref[...], h2.astype(compute_dtype),
                          (((1,), (0,)), ((), ())),
                          preferred_element_type=jnp.float32)    # [act, TILE_B]
    o_ref[...] = (out + b3_ref[...]).astype(o_ref.dtype)


def policy_network_forward(state, params, *, tile_b=8192, use_bf16=True,
                           out_dtype=jnp.float32, transpose_output=True):
    """state: [..., obs] float32.  params: PyTorch-native {w_i: [out, in], b_i: [out]}.

    Returns logits [..., act] (module contract).  With transpose_output=False,
    returns the kernel-native lane-dense [act, B] slab for fused consumers.
    """
    obs = state.shape[-1]
    lead = state.shape[:-1]
    act = params["w3"].shape[0]
    compute_dtype = jnp.bfloat16 if use_bf16 else jnp.float32

    x2d = state.reshape(-1, obs).astype(jnp.float32)   # native layout, no copy pass
    B = x2d.shape[0]

    # Lane tile: multiple of 128, capped by the (rounded-up) batch, and capped so
    # we keep >=2 grid steps when the batch allows (v7x megacore sharding).
    b_needed = 128 * pl.cdiv(B, 128)
    lane_tile = 128 * pl.cdiv(min(max(int(tile_b), 128), b_needed), 128)
    if b_needed >= 256:
        lane_tile = min(lane_tile, 128 * pl.cdiv(pl.cdiv(b_needed, 2), 128))
    n_tiles = pl.cdiv(B, lane_tile)
    b_pad = lane_tile * n_tiles

    w1 = params["w1"].astype(compute_dtype)
    w2 = params["w2"].astype(compute_dtype)
    w3 = params["w3"].astype(compute_dtype)
    b1 = params["b1"].reshape(-1, 1).astype(jnp.float32)
    b2 = params["b2"].reshape(-1, 1).astype(jnp.float32)
    b3 = params["b3"].reshape(-1, 1).astype(jnp.float32)

    # Weights/biases: full-array blocks with a constant index_map -> VMEM-resident
    # across all batch tiles (no per-step re-DMA).
    resident = lambda a: pl.BlockSpec(a.shape, lambda i: (0, 0))

    out_itemsize = np.dtype(out_dtype).itemsize
    w_bytes = ((w1.size + w2.size + w3.size) * np.dtype(compute_dtype).itemsize
               + (b1.size + b2.size + b3.size) * 4)
    flops = 2 * B * (obs * (2 * obs) + (2 * obs) * (2 * act) + (2 * act) * act)
    cost = pl.CostEstimate(
        flops=int(flops),
        transcendentals=0,
        bytes_accessed=int(B * obs * 4 + B * act * out_itemsize + w_bytes),
    )

    # Raise the scoped-VMEM limit only when large tiles actually need it
    # (v5e default is 16 MiB; v6e/v7x default is 32 MiB).
    per_lane_bytes = (obs * 4 * 2          # state tile (f32, double-buffered)
                      + 2 * obs * 4        # h1 (f32)
                      + 2 * act * 4        # h2 (f32)
                      + act * out_itemsize * 2)  # output tile (double-buffered)
    vmem_est = lane_tile * per_lane_bytes + int(w_bytes)
    vmem_limit = int(min(2 * vmem_est + (8 << 20), 48 << 20)) if vmem_est > (12 << 20) else None

    out_lane = pl.pallas_call(
        functools.partial(_policy_mlp_kernel, compute_dtype=compute_dtype),
        out_shape=jax.ShapeDtypeStruct((act, b_pad), out_dtype),
        grid=(n_tiles,),
        in_specs=[
            pl.BlockSpec((lane_tile, obs), lambda i: (i, 0)),   # native state tile
            resident(w1), resident(b1),
            resident(w2), resident(b2),
            resident(w3), resident(b3),
        ],
        out_specs=pl.BlockSpec((act, lane_tile), lambda i: (0, i)),
        compiler_params=pltpu.CompilerParams(
            dimension_semantics=("parallel",),
            vmem_limit_bytes=vmem_limit),
        cost_estimate=cost,
    )(x2d, w1, b1, w2, b2, w3, b3)

    if not transpose_output:
        return out_lane[:, :B]            # [act, B], lane-dense, for fused consumers
    logits = out_lane[:, :B].T            # tiny transpose (act rows)
    return logits.reshape(*lead, act)


def init_params(key, observation_shape, action_shape):
    """PyTorch-native nn.Linear shapes: W [out_features, in_features], b [out_features]."""
    dims = [
        (observation_shape, observation_shape * 2),   # input_layer
        (observation_shape * 2, action_shape * 2),    # intermediate_layer
        (action_shape * 2, action_shape),             # output_layer
    ]
    params = {}
    keys = jax.random.split(key, 2 * len(dims))
    for i, (fan_in, fan_out) in enumerate(dims):
        bound = 1.0 / (fan_in ** 0.5)                 # PyTorch default Linear init range
        params[f"w{i+1}"] = jax.random.uniform(
            keys[2 * i], (fan_out, fan_in), jnp.float32, -bound, bound)
        params[f"b{i+1}"] = jax.random.uniform(
            keys[2 * i + 1], (fan_out,), jnp.float32, -bound, bound)
    return params


def _reference_forward(state, params, *, use_bf16=True):
    """Pure-JAX reference using the same precision policy as the kernel."""
    cd = jnp.bfloat16 if use_bf16 else jnp.float32
    x = state.reshape(-1, state.shape[-1]).astype(cd)

    def linear(h, w, b):
        return (jnp.dot(h, w.astype(cd).T, preferred_element_type=jnp.float32)
                + b.astype(jnp.float32))

    h1 = jnp.maximum(linear(x, params["w1"], params["b1"]), 0.0).astype(cd)
    h2 = jnp.maximum(linear(h1, params["w2"], params["b2"]), 0.0).astype(cd)
    out = linear(h2, params["w3"], params["b3"])
    return out.reshape(*state.shape[:-1], params["w3"].shape[0])


if __name__ == "__main__":
    observation_shape = 16
    action_shape = 4

    key = jax.random.PRNGKey(0)
    pkey, skey1, skey2 = jax.random.split(key, 3)
    params = init_params(pkey, observation_shape, action_shape)

    # 1) Small batch: single grid step with an overhanging (partial) batch tile.
    #    f32 path (MXU default precision; not bit-exact with PyTorch f32 -> loose tol).
    state_small = jax.random.normal(skey1, (8, observation_shape), jnp.float32)
    logits_f32 = jax.block_until_ready(
        policy_network_forward(state_small, params, use_bf16=False))
    ref_f32_small = _reference_forward(state_small, params, use_bf16=False)
    assert logits_f32.shape == (8, action_shape)
    assert jnp.allclose(logits_f32, ref_f32_small, atol=2e-2, rtol=2e-2)

    # 2) Larger batch: multi-step grid plus a remainder (partial) last tile,
    #    default bf16-MXU perf path.
    state_big = jax.random.normal(skey2, (300, observation_shape), jnp.float32)
    logits_bf16 = jax.block_until_ready(policy_network_forward(state_big, params))
    ref_bf16 = _reference_forward(state_big, params, use_bf16=True)
    ref_f32 = _reference_forward(state_big, params, use_bf16=False)
    assert logits_bf16.shape == (300, action_shape)
    assert jnp.allclose(logits_bf16, ref_bf16, atol=1e-2, rtol=1e-2)
    assert jnp.allclose(logits_bf16, ref_f32, atol=1e-1, rtol=1e-1)

    print("KERNEL_OK")
</pallas_src>

<mosaic_0001>
module attributes {stable_mosaic.version = 11 : i64} {
  func.func @_policy_mlp_kernel(%arg0: i32, %arg1: memref<128x16xf32, #tpu.memory_space<vmem>>, %arg2: memref<32x16xf32, #tpu.memory_space<vmem>>, %arg3: memref<32x1xf32, #tpu.memory_space<vmem>>, %arg4: memref<8x32xf32, #tpu.memory_space<vmem>>, %arg5: memref<8x1xf32, #tpu.memory_space<vmem>>, %arg6: memref<4x8xf32, #tpu.memory_space<vmem>>, %arg7: memref<4x1xf32, #tpu.memory_space<vmem>>, %arg8: memref<4x128xf32, #tpu.memory_space<vmem>>) attributes {dimension_semantics = [#tpu.dimension_semantics<parallel>], iteration_bounds = array<i64: 1>, scalar_prefetch = 0 : i64, scratch_operands = 0 : i64, tpu.core_type = #tpu.core_type<tc>, window_params = [{transform_indices = @transform_0, window_bounds = array<i64: 128, 16>}, {pipeline_mode = #tpu.pipeline_mode<synchronous>, transform_indices = @transform_1, window_bounds = array<i64: 32, 16>}, {pipeline_mode = #tpu.pipeline_mode<synchronous>, transform_indices = @transform_2, window_bounds = array<i64: 32, 1>}, {pipeline_mode = #tpu.pipeline_mode<synchronous>, transform_indices = @transform_3, window_bounds = array<i64: 8, 32>}, {pipeline_mode = #tpu.pipeline_mode<synchronous>, transform_indices = @transform_4, window_bounds = array<i64: 8, 1>}, {pipeline_mode = #tpu.pipeline_mode<synchronous>, transform_indices = @transform_5, window_bounds = array<i64: 4, 8>}, {pipeline_mode = #tpu.pipeline_mode<synchronous>, transform_indices = @transform_6, window_bounds = array<i64: 4, 1>}, {transform_indices = @transform_7, window_bounds = array<i64: 4, 128>}]} {
    %c0 = arith.constant 0 : index
    %c0_0 = arith.constant 0 : index
    %0 = vector.load %arg1[%c0, %c0_0] : memref<128x16xf32, #tpu.memory_space<vmem>>, vector<128x16xf32>
    %c0_1 = arith.constant 0 : index
    %c0_2 = arith.constant 0 : index
    %1 = vector.load %arg2[%c0_1, %c0_2] : memref<32x16xf32, #tpu.memory_space<vmem>>, vector<32x16xf32>
    %cst = arith.constant dense<0.000000e+00> : vector<32x128xf32>
    %2 = tpu.matmul %1, %0, %cst {dimension_numbers = #tpu.dot_dimension_numbers<[1], [1], [0], [0], [0, 0, 1, 0], [], []>} : vector<32x16xf32>, vector<128x16xf32>, vector<32x128xf32> -> vector<32x128xf32>
    %c0_3 = arith.constant 0 : index
    %c0_4 = arith.constant 0 : index
    %3 = vector.load %arg3[%c0_3, %c0_4] : memref<32x1xf32, #tpu.memory_space<vmem>>, vector<32x1xf32>
    %4 = vector.broadcast %3 : vector<32x1xf32> to vector<32x128xf32>
    %5 = arith.addf %2, %4 : vector<32x128xf32>
    %cst_5 = arith.constant 0.000000e+00 : f32
    %6 = vector.broadcast %cst_5 : f32 to vector<32x128xf32>
    %7 = arith.maximumf %5, %6 : vector<32x128xf32>
    %c0_6 = arith.constant 0 : index
    %c0_7 = arith.constant 0 : index
    %8 = vector.load %arg4[%c0_6, %c0_7] : memref<8x32xf32, #tpu.memory_space<vmem>>, vector<8x32xf32>
    %cst_8 = arith.constant dense<0.000000e+00> : vector<8x128xf32>
    %9 = tpu.matmul %8, %7, %cst_8 {dimension_numbers = #tpu.dot_dimension_numbers<[1], [0], [0], [1], [0, 0, 1, 1], [], []>} : vector<8x32xf32>, vector<32x128xf32>, vector<8x128xf32> -> vector<8x128xf32>
    %c0_9 = arith.constant 0 : index
    %c0_10 = arith.constant 0 : index
    %10 = vector.load %arg5[%c0_9, %c0_10] : memref<8x1xf32, #tpu.memory_space<vmem>>, vector<8x1xf32>
    %11 = vector.broadcast %10 : vector<8x1xf32> to vector<8x128xf32>
    %12 = arith.addf %9, %11 : vector<8x128xf32>
    %cst_11 = arith.constant 0.000000e+00 : f32
    %13 = vector.broadcast %cst_11 : f32 to vector<8x128xf32>
    %14 = arith.maximumf %12, %13 : vector<8x128xf32>
    %c0_12 = arith.constant 0 : index
    %c0_13 = arith.constant 0 : index
    %15 = vector.load %arg6[%c0_12, %c0_13] : memref<4x8xf32, #tpu.memory_space<vmem>>, vector<4x8xf32>
    %cst_14 = arith.constant dense<0.000000e+00> : vector<4x128xf32>
    %16 = tpu.matmul %15, %14, %cst_14 {dimension_numbers = #tpu.dot_dimension_numbers<[1], [0], [0], [1], [0, 0, 1, 1], [], []>} : vector<4x8xf32>, vector<8x128xf32>, vector<4x128xf32> -> vector<4x128xf32>
    %c0_15 = arith.constant 0 : index
    %c0_16 = arith.constant 0 : index
    %17 = vector.load %arg7[%c0_15, %c0_16] : memref<4x1xf32, #tpu.memory_space<vmem>>, vector<4x1xf32>
    %18 = vector.broadcast %17 : vector<4x1xf32> to vector<4x128xf32>
    %19 = arith.addf %16, %18 : vector<4x128xf32>
    %c0_17 = arith.constant 0 : index
    %c0_18 = arith.constant 0 : index
    %20 = vector.load %arg8[%c0_17, %c0_18] : memref<4x128xf32, #tpu.memory_space<vmem>>, vector<4x128xf32>
    tpu.vector_store %arg8[%c0_17, %c0_18], %19 {strides = array<i32>} : memref<4x128xf32, #tpu.memory_space<vmem>>, vector<4x128xf32>,
    return
  }
  func.func @transform_0(%arg0: i32) -> (i32, i32) {
    %c0_i32 = arith.constant 0 : i32
    %c0_i32_0 = arith.constant 0 : i32
    return %arg0, %c0_i32 : i32, i32
  }
  func.func @transform_1(%arg0: i32) -> (i32, i32) {
    %c0_i32 = arith.constant 0 : i32
    %c0_i32_0 = arith.constant 0 : i32
    %c0_i32_1 = arith.constant 0 : i32
    return %c0_i32, %c0_i32_0 : i32, i32
  }
  func.func @transform_2(%arg0: i32) -> (i32, i32) {
    %c0_i32 = arith.constant 0 : i32
    %c0_i32_0 = arith.constant 0 : i32
    %c0_i32_1 = arith.constant 0 : i32
    return %c0_i32, %c0_i32_0 : i32, i32
  }
  func.func @transform_3(%arg0: i32) -> (i32, i32) {
    %c0_i32 = arith.constant 0 : i32
    %c0_i32_0 = arith.constant 0 : i32
    %c0_i32_1 = arith.constant 0 : i32
    return %c0_i32, %c0_i32_0 : i32, i32
  }
  func.func @transform_4(%arg0: i32) -> (i32, i32) {
    %c0_i32 = arith.constant 0 : i32
    %c0_i32_0 = arith.constant 0 : i32
    %c0_i32_1 = arith.constant 0 : i32
    return %c0_i32, %c0_i32_0 : i32, i32
  }
  func.func @transform_5(%arg0: i32) -> (i32, i32) {
    %c0_i32 = arith.constant 0 : i32
    %c0_i32_0 = arith.constant 0 : i32
    %c0_i32_1 = arith.constant 0 : i32
    return %c0_i32, %c0_i32_0 : i32, i32
  }
  func.func @transform_6(%arg0: i32) -> (i32, i32) {
    %c0_i32 = arith.constant 0 : i32
    %c0_i32_0 = arith.constant 0 : i32
    %c0_i32_1 = arith.constant 0 : i32
    return %c0_i32, %c0_i32_0 : i32, i32
  }
  func.func @transform_7(%arg0: i32) -> (i32, i32) {
    %c0_i32 = arith.constant 0 : i32
    %c0_i32_0 = arith.constant 0 : i32
    return %c0_i32, %arg0 : i32, i32
  }
}

</mosaic_0001>

<bundles_post_ra>
// kernel: tpu_custom_call.1
= control target key start
LH: loop header
LB: loop body
LE: loop exit
PB: predicated region body
PF: predicated region fallthrough
CT: control target
= control target key end

     0   :  { %vm71_vm0 = vcmask 130048   ;;  %v587_v6 = vmov 0   ;;  %s772_s0 = inlined_call_operand.vmem [shape: f32[8,16], index: 0, kind: input, shape index: {}]   ;;  %s773_s1 = inlined_call_operand.vmem [shape: f32[32,16], index: 1, kind: input, shape index: {}]   ;;  %s774_s2 = inlined_call_operand.vmem [shape: f32[32,1], index: 2, kind: input, shape index: {}]   ;;  %s775_s3 = inlined_call_operand.vmem [shape: f32[8,32], index: 3, kind: input, shape index: {}]   ;;  %s776_s4 = inlined_call_operand.vmem [shape: f32[8,1], index: 4, kind: input, shape index: {}]   ;;  %s777_s5 = inlined_call_operand.vmem [shape: f32[4,8], index: 5, kind: input, shape index: {}]   ;;  %s778_s6 = inlined_call_operand.vmem [shape: f32[4,1], index: 6, kind: input, shape index: {}]   ;;  %s779_s7 = inlined_call_operand.hbm [shape: f32[4,128], index: 7, kind: output, shape index: {}]  }
   0x1   :  { %v27_v0 = vld [vmem:[%s772_s0] sm:$0xff]  ;;  %v28_v1 = vld [vmem:[%s772_s0 + $0x8] sm:$0xff]  ;;  %v29_v2 = vld [vmem:[%s772_s0 + $0x10] sm:$0xff]  ;;  %561 = vset.pattern.permute.xlu0 %v587_v6  ;;  %562 = vset.pattern.permute.xlu1 %v587_v6 }
   0x2   :  { %v502_v3 = vpack.c.bf16 %v28_v1, %v27_v0  ;;  %vm643_vm1 = vmpackc.low %vm71_vm0, %vm71_vm0  ;;  %v30_v5 = vld [vmem:[%s772_s0 + $0x18] sm:$0xff]  ;;  %v43_v8 = vld [vmem:[%s773_s1] sm:$0xff] }
   0x3   :  { %v508_v7 = vpack.c.bf16 %v30_v5, %v29_v2  ;;  %v31_v9 = vld [vmem:[%s772_s0 + $0x20] sm:$0xff]  ;;  %v32_v10 = vld [vmem:[%s772_s0 + $0x28] sm:$0xff]  ;;  %480 = vmatprep.mubr.msk.f32.mxu0 %vm71_vm0, %v43_v8  ;;  %v49_v12 = vld [vmem:[%s774_s2 + $0x10] sm:$0xff] }
   0x4   :  { %504 = vmatprep.subr.msk.bf16.mxu0 %vm643_vm1, %v502_v3  ;;  %v47_v11 = vld [vmem:[%s774_s2] sm:$0xff]  ;;  %63 = vperm.xlu1 %562, %v49_v12   ;;  %v514_v13 = vpack.c.bf16 %v32_v10, %v31_v9  ;;  %v48_v14 = vld [vmem:[%s774_s2 + $0x8] sm:$0xff] }
   0x5   :  { %507 = vmatpush3.bf16.xpose.msk.msra.mxu0 %vm643_vm1, %v502_v3  ;;  %53 = vperm.xlu0 %561, %v47_v11  }
   0x6   :  { %510 = vmatprep.subr.msk.bf16.mxu0 %vm643_vm1, %v508_v7 }
   0x7   :  { %12 = vsyncpa [#allocation3], 0  ;;  %v50_v15 = vld [vmem:[%s774_s2 + $0x18] sm:$0xff]  ;;  %v222_v16 = vld [vmem:[%s776_s4] sm:$0xff]  ;;  %v588_v36 = vmov 0.0|0.0   ;;  %vm589_vm2 = vmmov 0  }
   0x8   :  { %68 = vperm.xlu1 %562, %v50_v15   ;;  %v33_v17 = vld [vmem:[%s772_s0 + $0x30] sm:$0xff]  ;;  %v34_v18 = vld [vmem:[%s772_s0 + $0x38] sm:$0xff]  ;;  %v304_v19 = vld [vmem:[%s778_s6] sm:$0xf]  ;;  %550 = vmatprep.subr.bf16.mxu1 %v588_v36  ;;  %v590_v37 = vmov 0.0   ;;  %vm228_vm3 = vcmask 261120  }
   0x9   :  { %58 = vperm.xlu0 %561, %v48_v14   ;;  %v520_v20 = vpack.c.bf16 %v34_v18, %v33_v17  ;;  %v35_v21 = vld [vmem:[%s772_s0 + $0x40] sm:$0xff]  ;;  %v36_v22 = vld [vmem:[%s772_s0 + $0x48] sm:$0xff]  ;;  %v37_v24 = vld [vmem:[%s772_s0 + $0x50] sm:$0xff]  ;;  %494 = vmatprep.mubr.msk.f32.mxu1 %vm589_vm2, %v590_v37  ;;  %vm310_vm4 = vcmask 64512   ;;  %s591_s2 = smov [#allocation2]  }
   0xa   :  { %v526_v23 = vpack.c.bf16 %v36_v22, %v35_v21  ;;  %v38_v25 = vld [vmem:[%s772_s0 + $0x58] sm:$0xff]  ;;  %v39_v27 = vld [vmem:[%s772_s0 + $0x60] sm:$0xff]  ;;  %v40_v28 = vld [vmem:[%s772_s0 + $0x68] sm:$0xff]  ;;  %s391_s29 = sshll.u32 %s591_s2, 4  ;;  %s392_s29 = int_to_ptr.vmem [resolvable:$true] %s391_s29 }
   0xb   :  { %v532_v26 = vpack.c.bf16 %v38_v25, %v37_v24  ;;  %v538_v29 = vpack.c.bf16 %v40_v28, %v39_v27  ;;  %v41_v30 = vld [vmem:[%s772_s0 + $0x70] sm:$0xff]  ;;  %v42_v31 = vld [vmem:[%s772_s0 + $0x78] sm:$0xff]  ;;  %v44_v33 = vld [vmem:[%s773_s1 + $0x8] sm:$0xff]  ;;  %p568_p1 = scmp.lt.s32.totalorder %s392_s29, %s392_s29 }
   0xc   :  { %307 = vperm.xlu1 %562, %v304_v19   ;;  %v544_v32 = vpack.c.bf16 %v42_v31, %v41_v30  ;;  %v45_v34 = vld [vmem:[%s773_s1 + $0x10] sm:$0xff]  ;;  %v46_v35 = vld [vmem:[%s773_s1 + $0x18] sm:$0xff]  ;;  %v221_v56 = vld [vmem:[%s775_s3] sm:$0xff]  ;;  %s563_s3 = scalar_lea.vmem %s392_s29, 64 }
   0xd   :  { %513 = vmatpush3.bf16.xpose.msk.msra.mxu0 %vm643_vm1, %v508_v7  ;;  %225 = vperm.xlu0 %561, %v222_v16   ;;  %v303_v62 = vld [vmem:[%s777_s5] sm:$0xf]  ;;  %p564_p0 = scmp.ne.s32.totalorder %s392_s29, %s563_s3  ;;  %p569_p2 = scmp.lt.s32.totalorder %s563_s3, %s563_s3 }
   0xe   :  { %516 = vmatprep.subr.msk.bf16.mxu0 %vm643_vm1, %v514_v13 }
   0xf   :  { %p570_p3 = por %p569_p2, %p568_p1 }
  0x11   :  { %p571_p4 = pnand %p570_p3, %p564_p0 }
  0x15   :  { %519 = vmatpush3.bf16.xpose.msk.msra.mxu0 %vm643_vm1, %v514_v13 }
  0x16   :  { %522 = vmatprep.subr.msk.bf16.mxu0 %vm643_vm1, %v520_v20 }
  0x1d   :  { %525 = vmatpush3.bf16.xpose.msk.msra.mxu0 %vm643_vm1, %v520_v20 }
  0x1e   :  { %528 = vmatprep.subr.msk.bf16.mxu0 %vm643_vm1, %v526_v23 }
  0x25   :  { %531 = vmatpush3.bf16.xpose.msk.msra.mxu0 %vm643_vm1, %v526_v23 }
  0x26   :  { %534 = vmatprep.subr.msk.bf16.mxu0 %vm643_vm1, %v532_v26 }
  0x2d   :  { %537 = vmatpush3.bf16.xpose.msk.msra.mxu0 %vm643_vm1, %v532_v26 }
  0x2e   :  { %540 = vmatprep.subr.msk.bf16.mxu0 %vm643_vm1, %v538_v29 }
  0x35   :  { %543 = vmatpush3.bf16.xpose.msk.msra.mxu0 %vm643_vm1, %v538_v29 }
  0x36   :  { %546 = vmatprep.subr.msk.bf16.mxu0 %vm643_vm1, %v544_v32 }
  0x3d   :  { %549 = vmatpush3.bf16.xpose.msk.msra.mxu0 %vm643_vm1, %v544_v32 }
  0x44   :  { %481 = vmatmul.mubr.msk.f32.vlgmr.msra.gmra.mrb[0].mxu0 %vm71_vm0, %v44_v33 }
  0x45   :  { %483 = vmatprep.mubr.msk.f32.mxu0 %vm71_vm0, %v45_v34 }
  0x48   :  { %484 = vmatmul.mubr.msk.f32.gmra.mrb[2].mxu0 %vm71_vm0, %v46_v35 }
  0x83   :  { %v64_v39 = vpop.permute.xlu1 %63 }
  0x84   :  { %v54_v38 = vpop.permute.xlu0 %53 }
  0x87   :  { %v69_v46 = vpop.permute.xlu1 %68 }
  0x88   :  { %v59_v40 = vpop.permute.xlu0 %58 }
  0x8b   :  { %v308_v63 = vpop.permute.xlu1 %307 }
  0x8c   :  { %v226_v57 = vpop.permute.xlu0 %225 }
 0x117   :  { %v482_v41 = vpop.f32.mrb[0].mxu0 }
 0x118   :  { %v204_v42 = vadd.f32 %v482_v41, %v59_v40  ;;  %v198_v43 = vpop.f32.mrb[1].mxu0 }
 0x119   :  { %v199_v44 = vadd.f32 %v198_v43, %v54_v38 }
 0x11a   :  { %v218_v45 = vmax.f32 %v204_v42, 0.0 }
 0x11b   :  { %v217_v47 = vmax.f32 %v199_v44, 0.0  ;;  %v485_v48 = vpop.f32.mrb[2].mxu0 }
 0x11c   :  { %v214_v49 = vadd.f32 %v485_v48, %v69_v46  ;;  %v208_v50 = vpop.f32.mrb[3].mxu0 }
 0x11d   :  { %v209_v51 = vadd.f32 %v208_v50, %v64_v39  ;;  %v551_v52 = vpack.c.bf16 %v218_v45, %v217_v47 }
 0x11e   :  { %v220_v53 = vmax.f32 %v214_v49, 0.0 }
 0x11f   :  { %v219_v54 = vmax.f32 %v209_v51, 0.0  ;;  %552 = vmatpush3.bf16.msra.mxu1 %v551_v52 }
 0x120   :  { %553 = vmatprep.subr.bf16.mxu1 %v588_v36 }
 0x121   :  { %v554_v55 = vpack.c.bf16 %v220_v53, %v219_v54 }
 0x123   :  { %555 = vmatpush3.bf16.msra.mxu1 %v554_v55 }
 0x124   :  { %497 = vmatprep.subr.mxu1 %v590_v37 }
 0x126   :  { %495 = vmatmul.mubr.msk.f32.vlgmr.msra.gmra.mrb[0].mxu1 %vm228_vm3, %v221_v56 }
 0x127   :  { %499 = vmatprep.mubr.msk.f32.mxu1 %vm589_vm2, %v590_v37 }
 0x1f9   :  { %v298_v58 = vpop.f32.mrb[0].mxu1 }
 0x1fa   :  { %v299_v59 = vadd.f32 %v298_v58, %v226_v57  ;;  %v496_v60 = vpop.f32.mrb[1].mxu1 }
 0x1fc   :  { %v302_v61 = vmax.f32 %v299_v59, 0.0 }
 0x1fe   :  { %498 = vmatpush3.msra.mxu1 %v302_v61 }
 0x1ff   :  { %500 = vmatmul.mubr.msk.f32.vlgmr.msra.gmra.mrb[2].mxu1 %vm310_vm4, %v303_v62 }
 0x2d2   :  { %v380_v0 = vpop.f32.mrb[2].mxu1 }
 0x2d3   :  { %v381_v1 = vadd.f32 %v380_v0, %v308_v63  ;;  %v501_v2 = vpop.f32.mrb[3].mxu1 }
 0x2d5   :  { %384 = vst [vmem:[#allocation2] sm:$0xf] %v381_v1 }
 0x2d6   :  { %574 = shalt.err (!%p571_p4)
}
 0x2d7   :  { %s575_s30 = scalar_lea.hbm %s779_s7, 64 }
 0x2d8   :  { %p576_p5 = scmp.ne.s32.totalorder %s779_s7, %s575_s30  ;;  %p579_p6 = scmp.lt.u32.totalorder %s575_s30, %s779_s7 }
 0x2da   :  { %p581_p7 = pnand %p579_p6, %p576_p5 }
 0x2dc   :  { %584 = shalt.err (!%p581_p7)
}
 0x2dd   :  { %394 = dma.vmem_to_hbm [thread:$0]  %s392_s29, 64, %s779_s7, [#allocation3]  }
 0x2de   :  { %585 = dma.done.wait [#allocation3], 64  }
 0x2df   :  { %586 = vsyncadd [#allocation3], 4294967232 }
 0x2e0   :  { %398 = vsyncpa [#allocation3], 1 }

</bundles_post_ra>
